<compile_context>
chip_gen: v7x
topology: tpu7x:2x2x1
jax: 0.10.0
libtpu: 0.0.40
codegen_flags: <defaults>
</compile_context>

<pallas_src>
import jax
import jax.numpy as jnp
from jax.experimental import pallas as pl
from jax.experimental.pallas import tpu as pltpu

_LANE = 128
_SUBLANE = 8


def _round_up(n, m):
    return ((n + m - 1) // m) * m


def _qnetwork_kernel(x_ref, w1_ref, w2_ref, w3_ref, b1_ref, b2_ref, b3_ref, o_ref):
    # x_ref: (TM, input_dim) f32 streamed tile; w*_ref bf16 / b*_ref f32 pinned.
    x = x_ref[...].astype(jnp.bfloat16)

    # fc1 + relu  (bf16 MXU operands, f32 accumulation)
    h1 = jnp.dot(x, w1_ref[...], preferred_element_type=jnp.float32) + b1_ref[...]
    h1 = jnp.maximum(h1, 0.0)
    # fc2 + relu
    h2 = jnp.dot(h1.astype(jnp.bfloat16), w2_ref[...],
                 preferred_element_type=jnp.float32) + b2_ref[...]
    h2 = jnp.maximum(h2, 0.0)
    # fc3 (no activation) — true out_dim columns; masked vst store is fine here
    # (the binding resource is HBM DMA / per-step overhead, not store bandwidth).
    out = jnp.dot(h2.astype(jnp.bfloat16), w3_ref[...],
                  preferred_element_type=jnp.float32) + b3_ref[...]
    o_ref[...] = out.astype(o_ref.dtype)


def prepare_qnetwork_params(params):
    """One-time prep, hoisted out of the per-call path: bf16 MXU weights and
    (1, N)-shaped f32 biases. Keeps the f32 weights for the XLA tiny-batch
    fallback so its numerics match the reference exactly."""
    return {
        "w1": params["w1"].astype(jnp.bfloat16),
        "w2": params["w2"].astype(jnp.bfloat16),
        "w3": params["w3"].astype(jnp.bfloat16),
        "b1": params["b1"].reshape(1, -1).astype(jnp.float32),
        "b2": params["b2"].reshape(1, -1).astype(jnp.float32),
        "b3": params["b3"].reshape(1, -1).astype(jnp.float32),
        "w1_f32": params["w1"], "w2_f32": params["w2"], "w3_f32": params["w3"],
    }


def _forward_xla(x, prep):
    h1 = jnp.maximum(x @ prep["w1_f32"] + prep["b1"], 0.0)
    h2 = jnp.maximum(h1 @ prep["w2_f32"] + prep["b2"], 0.0)
    return h2 @ prep["w3_f32"] + prep["b3"]


def qnetwork_forward(x, prep, *, block_m=4096, force_pallas=False):
    """x: (B, input_dim) float32. prep: output of prepare_qnetwork_params."""
    B, input_dim = x.shape
    H = prep["w1"].shape[1]
    out_dim = prep["w3"].shape[1]

    # Tiny batches: per-step overhead dominates and the MXU is ~idle; XLA's
    # fused dot is strictly faster, so skip the Pallas dispatch.
    if not force_pallas and B < 128:
        return _forward_xla(x, prep)

    # Batch tile: split across (at least) two grid steps whenever B >= 16 so
    # v7x's dual TensorCores both get work; cap at block_m for very large B so
    # large batches still run in few fat steps (per-step overhead ~0.35us).
    if B < 2 * _SUBLANE:
        TM = _round_up(B, _SUBLANE)
        B_run = TM
        x_run = jnp.pad(x.astype(jnp.float32), ((0, B_run - B), (0, 0)))
    else:
        TM = min(block_m, _round_up(pl.cdiv(B, 2), _SUBLANE))
        B_run = B
        x_run = x.astype(jnp.float32)
    grid_m = pl.cdiv(B_run, TM)

    flops = 2 * B_run * (input_dim * H + H * H + H * out_dim)
    bytes_accessed = (4 * B_run * (input_dim + out_dim)            # streamed x / out
                      + 2 * (input_dim * H + H * H + H * out_dim)  # bf16 weights
                      + 4 * (2 * H + out_dim))                     # f32 biases

    out = pl.pallas_call(
        _qnetwork_kernel,
        out_shape=jax.ShapeDtypeStruct((B_run, out_dim), jnp.float32),
        grid=(grid_m,),
        in_specs=[
            pl.BlockSpec((TM, input_dim), lambda i: (i, 0)),   # streamed x tiles
            pl.BlockSpec((input_dim, H), lambda i: (0, 0)),    # w1 pinned in VMEM
            pl.BlockSpec((H, H), lambda i: (0, 0)),            # w2 pinned
            pl.BlockSpec((H, out_dim), lambda i: (0, 0)),      # w3 pinned (true width)
            pl.BlockSpec((1, H), lambda i: (0, 0)),            # b1 pinned
            pl.BlockSpec((1, H), lambda i: (0, 0)),            # b2 pinned
            pl.BlockSpec((1, out_dim), lambda i: (0, 0)),      # b3 pinned
        ],
        out_specs=pl.BlockSpec((TM, out_dim), lambda i: (i, 0)),  # true-width output
        compiler_params=pltpu.CompilerParams(
            dimension_semantics=("parallel",),                 # v7x dual-TC sharding
            vmem_limit_bytes=32 * 1024 * 1024,
        ),
        cost_estimate=pl.CostEstimate(
            flops=flops, transcendentals=0, bytes_accessed=bytes_accessed),
    )(x_run, prep["w1"], prep["w2"], prep["w3"],
      prep["b1"], prep["b2"], prep["b3"])

    return out if B_run == B else out[:B]


def init_qnetwork_params(key, input_dim, output_dim, hidden=128):
    """Deterministic init mimicking PyTorch nn.Linear default:
    U(-1/sqrt(fan_in), 1/sqrt(fan_in)) for weights and biases.
    Weights stored transposed vs. torch, i.e. (in_features, out_features)."""
    def linear(k, fan_in, fan_out):
        kw, kb = jax.random.split(k)
        bound = 1.0 / jnp.sqrt(jnp.float32(fan_in))
        w = jax.random.uniform(kw, (fan_in, fan_out), jnp.float32, -bound, bound)
        b = jax.random.uniform(kb, (1, fan_out), jnp.float32, -bound, bound)
        return w, b

    k1, k2, k3 = jax.random.split(key, 3)
    w1, b1 = linear(k1, input_dim, hidden)
    w2, b2 = linear(k2, hidden, hidden)
    w3, b3 = linear(k3, hidden, output_dim)
    return {"w1": w1, "b1": b1, "w2": w2, "b2": b2, "w3": w3, "b3": b3}


def qnetwork_ref(x, params):
    """Pure-JAX f32 reference for correctness checking."""
    h1 = jnp.maximum(x @ params["w1"] + params["b1"], 0.0)
    h2 = jnp.maximum(h1 @ params["w2"] + params["b2"], 0.0)
    return h2 @ params["w3"] + params["b3"]


if __name__ == "__main__":
    key = jax.random.PRNGKey(0)
    k_params, k_x1, k_x2 = jax.random.split(key, 3)

    input_dim, output_dim = 8, 4
    params = init_qnetwork_params(k_params, input_dim, output_dim)
    prep = prepare_qnetwork_params(params)   # one-time weight/bias prep

    # Small, module-consistent shape: force the Pallas path to exercise the kernel.
    x_small = jax.random.normal(k_x1, (2, input_dim), jnp.float32)
    out_small = jax.block_until_ready(
        qnetwork_forward(x_small, prep, force_pallas=True))
    ref_small = qnetwork_ref(x_small, params)
    assert out_small.shape == (2, output_dim)
    assert jnp.allclose(out_small, ref_small, atol=5e-2, rtol=5e-2), \
        "small-batch mismatch vs reference"

    # Larger, non-multiple-of-tile batch: exercises the 2-step "parallel" grid,
    # ragged last block handling, and the pad/slice-free wrapper path.
    x_big = jax.random.normal(k_x2, (1000, input_dim), jnp.float32)
    out_big = jax.block_until_ready(qnetwork_forward(x_big, prep))
    ref_big = qnetwork_ref(x_big, params)
    assert out_big.shape == (1000, output_dim)
    assert jnp.allclose(out_big, ref_big, atol=5e-2, rtol=5e-2), \
        "large-batch mismatch vs reference"

    print("KERNEL_OK")
</pallas_src>

<mosaic_0001>
module attributes {stable_mosaic.version = 11 : i64} {
  func.func @_qnetwork_kernel(%arg0: i32, %arg1: memref<8x8xf32, #tpu.memory_space<vmem>>, %arg2: memref<8x128xbf16, #tpu.memory_space<vmem>>, %arg3: memref<128x128xbf16, #tpu.memory_space<vmem>>, %arg4: memref<128x4xbf16, #tpu.memory_space<vmem>>, %arg5: memref<1x128xf32, #tpu.memory_space<vmem>>, %arg6: memref<1x128xf32, #tpu.memory_space<vmem>>, %arg7: memref<1x4xf32, #tpu.memory_space<vmem>>, %arg8: memref<8x4xf32, #tpu.memory_space<vmem>>) attributes {dimension_semantics = [#tpu.dimension_semantics<parallel>], iteration_bounds = array<i64: 1>, scalar_prefetch = 0 : i64, scratch_operands = 0 : i64, tpu.core_type = #tpu.core_type<tc>, window_params = [{transform_indices = @transform_0, window_bounds = array<i64: 8, 8>}, {pipeline_mode = #tpu.pipeline_mode<synchronous>, transform_indices = @transform_1, window_bounds = array<i64: 8, 128>}, {pipeline_mode = #tpu.pipeline_mode<synchronous>, transform_indices = @transform_2, window_bounds = array<i64: 128, 128>}, {pipeline_mode = #tpu.pipeline_mode<synchronous>, transform_indices = @transform_3, window_bounds = array<i64: 128, 4>}, {pipeline_mode = #tpu.pipeline_mode<synchronous>, transform_indices = @transform_4, window_bounds = array<i64: 1, 128>}, {pipeline_mode = #tpu.pipeline_mode<synchronous>, transform_indices = @transform_5, window_bounds = array<i64: 1, 128>}, {pipeline_mode = #tpu.pipeline_mode<synchronous>, transform_indices = @transform_6, window_bounds = array<i64: 1, 4>}, {transform_indices = @transform_7, window_bounds = array<i64: 8, 4>}]} {
    %c0 = arith.constant 0 : index
    %c0_0 = arith.constant 0 : index
    %0 = vector.load %arg1[%c0, %c0_0] : memref<8x8xf32, #tpu.memory_space<vmem>>, vector<8x8xf32>
    %1 = arith.truncf %0 : vector<8x8xf32> to vector<8x8xbf16>
    %c0_1 = arith.constant 0 : index
    %c0_2 = arith.constant 0 : index
    %2 = vector.load %arg2[%c0_1, %c0_2] : memref<8x128xbf16, #tpu.memory_space<vmem>>, vector<8x128xbf16>
    %cst = arith.constant dense<0.000000e+00> : vector<8x128xf32>
    %3 = tpu.matmul %1, %2, %cst {dimension_numbers = #tpu.dot_dimension_numbers<[1], [0], [0], [1], [0, 0, 1, 1], [], []>} : vector<8x8xbf16>, vector<8x128xbf16>, vector<8x128xf32> -> vector<8x128xf32>
    %c0_3 = arith.constant 0 : index
    %c0_4 = arith.constant 0 : index
    %4 = vector.load %arg5[%c0_3, %c0_4] : memref<1x128xf32, #tpu.memory_space<vmem>>, vector<1x128xf32>
    %5 = vector.broadcast %4 : vector<1x128xf32> to vector<8x128xf32>
    %6 = arith.addf %3, %5 : vector<8x128xf32>
    %cst_5 = arith.constant 0.000000e+00 : f32
    %7 = vector.broadcast %cst_5 : f32 to vector<8x128xf32>
    %8 = arith.maximumf %6, %7 : vector<8x128xf32>
    %9 = arith.truncf %8 : vector<8x128xf32> to vector<8x128xbf16>
    %c0_6 = arith.constant 0 : index
    %c0_7 = arith.constant 0 : index
    %10 = vector.load %arg3[%c0_6, %c0_7] : memref<128x128xbf16, #tpu.memory_space<vmem>>, vector<128x128xbf16>
    %cst_8 = arith.constant dense<0.000000e+00> : vector<8x128xf32>
    %11 = tpu.matmul %9, %10, %cst_8 {dimension_numbers = #tpu.dot_dimension_numbers<[1], [0], [0], [1], [0, 0, 1, 1], [], []>} : vector<8x128xbf16>, vector<128x128xbf16>, vector<8x128xf32> -> vector<8x128xf32>
    %c0_9 = arith.constant 0 : index
    %c0_10 = arith.constant 0 : index
    %12 = vector.load %arg6[%c0_9, %c0_10] : memref<1x128xf32, #tpu.memory_space<vmem>>, vector<1x128xf32>
    %13 = vector.broadcast %12 : vector<1x128xf32> to vector<8x128xf32>
    %14 = arith.addf %11, %13 : vector<8x128xf32>
    %cst_11 = arith.constant 0.000000e+00 : f32
    %15 = vector.broadcast %cst_11 : f32 to vector<8x128xf32>
    %16 = arith.maximumf %14, %15 : vector<8x128xf32>
    %17 = arith.truncf %16 : vector<8x128xf32> to vector<8x128xbf16>
    %c0_12 = arith.constant 0 : index
    %c0_13 = arith.constant 0 : index
    %18 = vector.load %arg4[%c0_12, %c0_13] : memref<128x4xbf16, #tpu.memory_space<vmem>>, vector<128x4xbf16>
    %cst_14 = arith.constant dense<0.000000e+00> : vector<8x4xf32>
    %19 = tpu.matmul %17, %18, %cst_14 {dimension_numbers = #tpu.dot_dimension_numbers<[1], [0], [0], [1], [0, 0, 1, 1], [], []>} : vector<8x128xbf16>, vector<128x4xbf16>, vector<8x4xf32> -> vector<8x4xf32>
    %c0_15 = arith.constant 0 : index
    %c0_16 = arith.constant 0 : index
    %20 = vector.load %arg7[%c0_15, %c0_16] : memref<1x4xf32, #tpu.memory_space<vmem>>, vector<1x4xf32>
    %21 = vector.broadcast %20 : vector<1x4xf32> to vector<8x4xf32>
    %22 = arith.addf %19, %21 : vector<8x4xf32>
    %c0_17 = arith.constant 0 : index
    %c0_18 = arith.constant 0 : index
    %23 = vector.load %arg8[%c0_17, %c0_18] : memref<8x4xf32, #tpu.memory_space<vmem>>, vector<8x4xf32>
    tpu.vector_store %arg8[%c0_17, %c0_18], %22 {strides = array<i32>} : memref<8x4xf32, #tpu.memory_space<vmem>>, vector<8x4xf32>,
    return
  }
  func.func @transform_0(%arg0: i32) -> (i32, i32) {
    %c0_i32 = arith.constant 0 : i32
    %c0_i32_0 = arith.constant 0 : i32
    return %arg0, %c0_i32 : i32, i32
  }
  func.func @transform_1(%arg0: i32) -> (i32, i32) {
    %c0_i32 = arith.constant 0 : i32
    %c0_i32_0 = arith.constant 0 : i32
    %c0_i32_1 = arith.constant 0 : i32
    return %c0_i32, %c0_i32_0 : i32, i32
  }
  func.func @transform_2(%arg0: i32) -> (i32, i32) {
    %c0_i32 = arith.constant 0 : i32
    %c0_i32_0 = arith.constant 0 : i32
    %c0_i32_1 = arith.constant 0 : i32
    return %c0_i32, %c0_i32_0 : i32, i32
  }
  func.func @transform_3(%arg0: i32) -> (i32, i32) {
    %c0_i32 = arith.constant 0 : i32
    %c0_i32_0 = arith.constant 0 : i32
    %c0_i32_1 = arith.constant 0 : i32
    return %c0_i32, %c0_i32_0 : i32, i32
  }
  func.func @transform_4(%arg0: i32) -> (i32, i32) {
    %c0_i32 = arith.constant 0 : i32
    %c0_i32_0 = arith.constant 0 : i32
    %c0_i32_1 = arith.constant 0 : i32
    return %c0_i32, %c0_i32_0 : i32, i32
  }
  func.func @transform_5(%arg0: i32) -> (i32, i32) {
    %c0_i32 = arith.constant 0 : i32
    %c0_i32_0 = arith.constant 0 : i32
    %c0_i32_1 = arith.constant 0 : i32
    return %c0_i32, %c0_i32_0 : i32, i32
  }
  func.func @transform_6(%arg0: i32) -> (i32, i32) {
    %c0_i32 = arith.constant 0 : i32
    %c0_i32_0 = arith.constant 0 : i32
    %c0_i32_1 = arith.constant 0 : i32
    return %c0_i32, %c0_i32_0 : i32, i32
  }
  func.func @transform_7(%arg0: i32) -> (i32, i32) {
    %c0_i32 = arith.constant 0 : i32
    %c0_i32_0 = arith.constant 0 : i32
    return %arg0, %c0_i32 : i32, i32
  }
}

</mosaic_0001>

<bundles_post_ra>
// kernel: tpu_custom_call.1
= control target key start
LH: loop header
LB: loop body
LE: loop exit
PB: predicated region body
PF: predicated region fallthrough
CT: control target
= control target key end

     0   :  { %12 = vsyncpa [#allocation3], 0  ;;  %s459_s24 = smov [#allocation2]   ;;  %s600_s0 = inlined_call_operand.vmem [shape: f32[8,8], index: 0, kind: input, shape index: {}]   ;;  %s601_s1 = inlined_call_operand.hbm [shape: bf16[8,128], index: 1, kind: input, shape index: {}]   ;;  %s602_s2 = inlined_call_operand.vmem [shape: bf16[128,128], index: 2, kind: input, shape index: {}]   ;;  %s603_s3 = inlined_call_operand.vmem [shape: bf16[128,4], index: 3, kind: input, shape index: {}]   ;;  %s604_s4 = inlined_call_operand.vmem [shape: f32[1,128], index: 4, kind: input, shape index: {}]   ;;  %s605_s5 = inlined_call_operand.vmem [shape: f32[1,128], index: 5, kind: input, shape index: {}]   ;;  %s606_s6 = inlined_call_operand.vmem [shape: f32[1,4], index: 6, kind: input, shape index: {}]   ;;  %s607_s7 = inlined_call_operand.vmem [shape: f32[8,4], index: 7, kind: output, shape index: {}]  }
   0x1   :  { %s21_s25 = sshll.u32 %s459_s24, 4  ;;  %s435_s28 = scalar_lea.hbm %s601_s1, 64  ;;  %s22_s25 = int_to_ptr.vmem [resolvable:$true] %s21_s25 }
   0x2   :  { %p436_p0 = scmp.ne.s32.totalorder %s601_s1, %s435_s28  ;;  %p439_p1 = scmp.lt.u32.totalorder %s435_s28, %s601_s1 }
   0x4   :  { %p441_p2 = pnand %p439_p1, %p436_p0 }
   0x6   :  { %444 = shalt.err (!%p441_p2)
}
   0x7   :  { %s445_s10 = scalar_lea.vmem %s22_s25, 64  ;;  %p450_p4 = scmp.lt.s32.totalorder %s22_s25, %s22_s25 }
   0x8   :  { %p446_p3 = scmp.ne.s32.totalorder %s22_s25, %s445_s10  ;;  %p451_p5 = scmp.lt.s32.totalorder %s445_s10, %s445_s10 }
   0xa   :  { %p452_p6 = por %p451_p5, %p450_p4 }
   0xc   :  { %p453_p7 = pnand %p452_p6, %p446_p3 }
   0xe   :  { %456 = shalt.err (!%p453_p7)
}
   0xf   :  { %24 = dma.hbm_to_vmem [thread:$0]  %s601_s1, 64, %s22_s25, [#allocation3]  }
  0x10   :  { %457 = dma.done.wait [#allocation3], 64  }
  0x11   :  { %458 = vsyncadd [#allocation3], 4294967232  ;;  %v460_v0 = vmov 0.0   ;;  %vm461_vm0 = vmmov 0   ;;  %vm53_vm1 = vcmask 1043456   ;;  %v39_v2 = vld [vmem:[%s600_s0] sm:$0xff] }
  0x12   :  { %370 = vmatprep.subr.bf16.mxu0 %v460_v0  ;;  %372 = vmatprep.mubr.msk.bf16.mxu0 %vm461_vm0, %v460_v0  ;;  %v41_v1 = vld [vmem:[#allocation2] sm:$0xf]  ;;  %v40_v4 = vpack.c.bf16 %v39_v2, %v39_v2  ;;  %vm49_vm2 = vcmask 64512   ;;  %v420_v6 = vld [vmem:[%s602_s2 + $0x8] sm:$0xff]   ;;  %v421_v7 = vld [vmem:[%s602_s2 + $0x10] sm:$0xff]   ;;  %vm323_vm3 = vcmask 31744  }
  0x13   :  { %376 = vmatprep.subr.bf16.mxu1 %v460_v0  ;;  %392 = vmatprep.mubr.msk.bf16.mxu1 %vm461_vm0, %v460_v0  ;;  %v55_v3 = vsel %vm53_vm1, %v41_v1, 0  ;;  %v419_v5 = vld [vmem:[%s602_s2] sm:$0xff]   ;;  %v422_v8 = vld [vmem:[%s602_s2 + $0x18] sm:$0xff]   ;;  %v424_v10 = vld [vmem:[%s602_s2 + $0x28] sm:$0xff]  }
  0x14   :  { %371 = vmatpush3.bf16.msra.mxu0 %v55_v3  ;;  %377 = vmatpush3.bf16.msra.mxu1 %v419_v5  ;;  %v423_v9 = vld [vmem:[%s602_s2 + $0x20] sm:$0xff]   ;;  %v425_v11 = vld [vmem:[%s602_s2 + $0x30] sm:$0xff]   ;;  %v426_v12 = vld [vmem:[%s602_s2 + $0x38] sm:$0xff]  }
  0x15   :  { %396 = vmatprep.subr.bf16.mxu0 %v460_v0  ;;  %378 = vmatprep.subr.bf16.mxu1 %v460_v0  ;;  %v427_v13 = vld [vmem:[%s603_s3] sm:$0xff]   ;;  %v428_v14 = vld [vmem:[%s603_s3 + $0x8] sm:$0xff]   ;;  %v429_v15 = vld [vmem:[%s603_s3 + $0x10] sm:$0xff]  }
  0x16   :  { %v430_v16 = vld [vmem:[%s603_s3 + $0x18] sm:$0xff]   ;;  %v431_v17 = vld [vmem:[%s603_s3 + $0x20] sm:$0xff]   ;;  %v432_v18 = vld [vmem:[%s603_s3 + $0x28] sm:$0xff]  }
  0x17   :  { %373 = vmatmul.mubr.msk.bf16.vlgmr.msra.gmra.mrb[0].mxu0 %vm49_vm2, %v40_v4  ;;  %v330_v19 = vld [vmem:[%s604_s4] ss:$0 sm:$0xff]  ;;  %v433_v27 = vld [vmem:[%s603_s3 + $0x30] sm:$0xff]   ;;  %v434_v28 = vld [vmem:[%s603_s3 + $0x38] sm:$0xff]  }
  0x18   :  { %412 = vmatprep.mubr.msk.bf16.mxu0 %vm461_vm0, %v460_v0  ;;  %379 = vmatpush3.bf16.msra.mxu1 %v420_v6  ;;  %v332_v29 = vld [vmem:[%s605_s5] ss:$0 sm:$0xff] }
  0x19   :  { %380 = vmatprep.subr.bf16.mxu1 %v460_v0  ;;  %397 = vmatpush3.bf16.msra.mxu0 %v427_v13  ;;  %v341_v37 = vld [vmem:[%s606_s6] ss:$0 sm:$0xff] }
  0x1a   :  { %398 = vmatprep.subr.bf16.mxu0 %v460_v0 }
  0x1c   :  { %381 = vmatpush3.bf16.msra.mxu1 %v421_v7 }
  0x1d   :  { %382 = vmatprep.subr.bf16.mxu1 %v460_v0  ;;  %399 = vmatpush3.bf16.msra.mxu0 %v428_v14 }
  0x1e   :  { %400 = vmatprep.subr.bf16.mxu0 %v460_v0 }
  0x20   :  { %383 = vmatpush3.bf16.msra.mxu1 %v422_v8 }
  0x21   :  { %384 = vmatprep.subr.bf16.mxu1 %v460_v0  ;;  %401 = vmatpush3.bf16.msra.mxu0 %v429_v15 }
  0x22   :  { %402 = vmatprep.subr.bf16.mxu0 %v460_v0 }
  0x24   :  { %385 = vmatpush3.bf16.msra.mxu1 %v423_v9 }
  0x25   :  { %386 = vmatprep.subr.bf16.mxu1 %v460_v0  ;;  %403 = vmatpush3.bf16.msra.mxu0 %v430_v16 }
  0x26   :  { %404 = vmatprep.subr.bf16.mxu0 %v460_v0 }
  0x28   :  { %387 = vmatpush3.bf16.msra.mxu1 %v424_v10 }
  0x29   :  { %388 = vmatprep.subr.bf16.mxu1 %v460_v0  ;;  %405 = vmatpush3.bf16.msra.mxu0 %v431_v17 }
  0x2a   :  { %406 = vmatprep.subr.bf16.mxu0 %v460_v0 }
  0x2c   :  { %389 = vmatpush3.bf16.msra.mxu1 %v425_v11 }
  0x2d   :  { %390 = vmatprep.subr.bf16.mxu1 %v460_v0  ;;  %407 = vmatpush3.bf16.msra.mxu0 %v432_v18 }
  0x2e   :  { %408 = vmatprep.subr.bf16.mxu0 %v460_v0 }
  0x30   :  { %391 = vmatpush3.bf16.msra.mxu1 %v426_v12 }
  0x31   :  { %409 = vmatpush3.bf16.msra.mxu0 %v433_v27 }
  0x32   :  { %410 = vmatprep.subr.bf16.mxu0 %v460_v0 }
  0x35   :  { %411 = vmatpush3.bf16.msra.mxu0 %v434_v28 }
  0xea   :  { %v91_v20 = vpop.f32.mrb[0].mxu0 }
  0xeb   :  { %v92_v21 = vadd.f32 %v330_v19, %v91_v20  ;;  %v374_v22 = vpop.f32.mrb[1].mxu0 }
  0xec   :  { %v94_v23 = vpop.f32.mrb[2].mxu0 }
  0xed   :  { %v97_v24 = vmax.f32 %v92_v21, 0.0  ;;  %v375_v25 = vpop.f32.mrb[3].mxu0 }
  0xef   :  { %v98_v26 = vpack.c.bf16 %v97_v24, %v97_v24 }
  0xf1   :  { %393 = vmatmul.mubr.bf16.vlgmr.msra.gmra.mrb[0].mxu1 %v98_v26 }
 0x1c4   :  { %v204_v30 = vpop.f32.mrb[0].mxu1 }
 0x1c5   :  { %v205_v31 = vadd.f32 %v332_v29, %v204_v30  ;;  %v394_v32 = vpop.f32.mrb[1].mxu1 }
 0x1c6   :  { %v207_v33 = vpop.f32.mrb[2].mxu1 }
 0x1c7   :  { %v210_v34 = vmax.f32 %v205_v31, 0.0  ;;  %v395_v35 = vpop.f32.mrb[3].mxu1 }
 0x1c9   :  { %v211_v36 = vpack.c.bf16 %v210_v34, %v210_v34 }
 0x1cb   :  { %413 = vmatmul.mubr.bf16.vlgmr.msra.gmra.mrb[4].mxu0 %v211_v36 }
 0x29e   :  { %v317_v38 = vpop.f32.mrb[4].mxu0 }
 0x29f   :  { %v318_v39 = vadd.f32 %v341_v37, %v317_v38  ;;  %v414_v40 = vpop.f32.mrb[5].mxu0 }
 0x2a0   :  { %v320_v41 = vpop.f32.mrb[6].mxu0 }
 0x2a1   :  { %324 = vst.msk [vmem:[%s607_s7] sm:$0xff] %vm323_vm3, %v318_v39  ;;  %v415_v42 = vpop.f32.mrb[7].mxu0 }
 0x2a2   :  { %329 = vsyncpa [#allocation3], 1 }

</bundles_post_ra>
